<compile_context>
chip_gen: v6e
topology: v6e:2x2x1
jax: 0.10.0
libtpu: 0.0.40
codegen_flags: <defaults>
</compile_context>

<pallas_src>
import jax
import jax.numpy as jnp
from jax.experimental import pallas as pl
from jax.experimental.pallas import tpu as pltpu


def _awl_kernel(params_ref, losses_ref, sum_ref, dparams_ref, dlosses_ref):
    # params_ref:  (1, NUM) f32 VMEM -- learnable uncertainty weights.
    # losses_ref:  (1, NUM) f32 VMEM -- per-task losses.
    # sum_ref:     (1, 1)   f32 SMEM -- scalar forward value.
    # dparams_ref: (1, NUM) f32 VMEM -- d(loss_sum)/d(params).
    # dlosses_ref: (1, NUM) f32 VMEM -- d(loss_sum)/d(losses).
    p = params_ref[...]
    l = losses_ref[...]

    p2 = p * p
    inv_p = pl.reciprocal(p)      # exact; single EUP push, reused below
    inv_p2 = inv_p * inv_p        # VPU mul (no second EUP reciprocal)

    # Forward:  sum_i  0.5 / p_i^2 * l_i + log(1 + p_i^2)
    term = 0.5 * inv_p2 * l + jnp.log(1.0 + p2)
    sum_ref[0, 0] = jnp.sum(term)

    # Analytic gradients fused into the same launch:
    #   d/dp_i = -l_i / p_i^3 + 2 p_i / (1 + p_i^2)
    #   d/dl_i = 0.5 / p_i^2
    # Exact reciprocal for (1 + p^2): approx=True (~1e-3..1e-4 rel err) would
    # violate the 1e-5 gradient tolerance vs. the reference.
    dparams_ref[...] = -l * inv_p2 * inv_p + 2.0 * p * pl.reciprocal(1.0 + p2)
    dlosses_ref[...] = 0.5 * inv_p2


def _awl_pallas(params_f32, losses_f32):
    """Single pallas_call: two small VMEM inputs, SMEM scalar out, fused grads out."""
    num = params_f32.shape[0]
    p2d = params_f32.reshape(1, num)   # layout-only reshape, no HBM roundtrip
    l2d = losses_f32.reshape(1, num)
    s, dp, dl = pl.pallas_call(
        _awl_kernel,
        out_shape=(
            jax.ShapeDtypeStruct((1, 1), jnp.float32),    # scalar loss (SMEM)
            jax.ShapeDtypeStruct((1, num), jnp.float32),  # d/dparams  (VMEM)
            jax.ShapeDtypeStruct((1, num), jnp.float32),  # d/dlosses  (VMEM)
        ),
        in_specs=[
            pl.BlockSpec(memory_space=pltpu.VMEM),
            pl.BlockSpec(memory_space=pltpu.VMEM),
        ],
        out_specs=(
            pl.BlockSpec(memory_space=pltpu.SMEM),
            pl.BlockSpec(memory_space=pltpu.VMEM),
            pl.BlockSpec(memory_space=pltpu.VMEM),
        ),
    )(p2d, l2d)
    return s[0, 0], dp, dl


@jax.custom_vjp
def awl_forward(params, losses):
    """params: (num,) f32 learnable weights; losses: (num,) f32 per-task losses.

    Requires f32 inputs (the public wrapper casts); returns a scalar f32 identical
    to the PyTorch module's forward.
    """
    s, _, _ = _awl_pallas(params, losses)
    return s


def _awl_fwd_rule(params, losses):
    s, dp, dl = _awl_pallas(params, losses)
    return s, (dp, dl)


def _awl_bwd_rule(res, g):
    dp, dl = res  # each (1, num) f32 from the fused kernel
    return g * dp[0], g * dl[0]


awl_forward.defvjp(_awl_fwd_rule, _awl_bwd_rule)


def automatic_weighted_loss(params, *losses):
    """PyTorch-style forward(*x) wrapper.

    Prefer passing the per-task losses as a single (num,) array; the varargs path
    stacks N scalar device arrays (extra XLA ops in front of a microsecond kernel).
    All f32 casting happens here, outside the custom_vjp, so cotangent dtypes match.
    """
    # TODO(synk): for production, fuse this epilogue into the fusion that produces the
    # per-task losses, or batch many AWL instances per launch (lane-dense outputs,
    # parallel grid across v7x TensorCores) instead of a standalone micro-launch.
    if len(losses) == 1 and jnp.ndim(losses[0]) == 1:
        losses_vec = jnp.asarray(losses[0], jnp.float32)
    else:
        losses_vec = jnp.stack(
            [jnp.asarray(l, jnp.float32).reshape(()) for l in losses]
        )
    return awl_forward(jnp.asarray(params, jnp.float32), losses_vec)


def _reference(params, losses):
    p2 = params.astype(jnp.float32) ** 2
    return jnp.sum(0.5 / p2 * losses + jnp.log(1.0 + p2))


if __name__ == "__main__":
    num = 2
    # Deterministic init: module default is torch.ones(num).
    params = jnp.ones((num,), dtype=jnp.float32)

    # Deterministic example per-task losses as a single (num,) vector.
    key = jax.random.PRNGKey(0)
    losses = jnp.abs(jax.random.normal(key, (num,), dtype=jnp.float32)) + 0.1

    # Forward.
    out = jax.block_until_ready(awl_forward(params, losses))
    ref = _reference(params, losses)
    assert jnp.allclose(out, ref, rtol=1e-5, atol=1e-5), (out, ref)

    # PyTorch-style varargs API (compat shim).
    out2 = jax.block_until_ready(automatic_weighted_loss(params, losses[0], losses[1]))
    assert jnp.allclose(out2, ref, rtol=1e-5, atol=1e-5), (out2, ref)

    # Gradients via the fused custom_vjp (no second kernel launch for backward).
    gk_p, gk_l = jax.block_until_ready(
        jax.grad(awl_forward, argnums=(0, 1))(params, losses)
    )
    gr_p, gr_l = jax.grad(_reference, argnums=(0, 1))(params, losses)
    assert jnp.allclose(gk_p, gr_p, rtol=1e-5, atol=1e-5), (gk_p, gr_p)
    assert jnp.allclose(gk_l, gr_l, rtol=1e-5, atol=1e-5), (gk_l, gr_l)

    print("KERNEL_OK")
</pallas_src>

<mosaic_0001>
module attributes {stable_mosaic.version = 11 : i64} {
  func.func @_awl_kernel(%arg0: memref<1x2xf32, #tpu.memory_space<vmem>>, %arg1: memref<1x2xf32, #tpu.memory_space<vmem>>, %arg2: memref<1x1xf32, #tpu.memory_space<smem>>, %arg3: memref<1x2xf32, #tpu.memory_space<vmem>>, %arg4: memref<1x2xf32, #tpu.memory_space<vmem>>) attributes {dimension_semantics = [], scalar_prefetch = 0 : i64, scratch_operands = 0 : i64, tpu.core_type = #tpu.core_type<tc>} {
    %c0 = arith.constant 0 : index
    %c0_0 = arith.constant 0 : index
    %0 = vector.load %arg0[%c0, %c0_0] : memref<1x2xf32, #tpu.memory_space<vmem>>, vector<1x2xf32>
    %c0_1 = arith.constant 0 : index
    %c0_2 = arith.constant 0 : index
    %1 = vector.load %arg1[%c0_1, %c0_2] : memref<1x2xf32, #tpu.memory_space<vmem>>, vector<1x2xf32>
    %2 = arith.mulf %0, %0 : vector<1x2xf32>
    %3 = tpu.reciprocal %0 : vector<1x2xf32> -> vector<1x2xf32>
    %4 = arith.mulf %3, %3 : vector<1x2xf32>
    %cst = arith.constant 5.000000e-01 : f32
    %5 = vector.broadcast %cst : f32 to vector<1x2xf32>
    %6 = arith.mulf %5, %4 : vector<1x2xf32>
    %7 = arith.mulf %6, %1 : vector<1x2xf32>
    %cst_3 = arith.constant 1.000000e+00 : f32
    %8 = vector.broadcast %cst_3 : f32 to vector<1x2xf32>
    %9 = arith.addf %8, %2 : vector<1x2xf32>
    %10 = math.log %9 : vector<1x2xf32>
    %11 = arith.addf %7, %10 : vector<1x2xf32>
    %12 = vector.shape_cast %11 : vector<1x2xf32> to vector<1x1x2xf32>
    %cst_4 = arith.constant dense<0.000000e+00> : vector<1xf32>
    %13 = vector.multi_reduction <add>, %12, %cst_4 [1, 2] : vector<1x1x2xf32> to vector<1xf32>
    %14 = vector.shape_cast %13 : vector<1xf32> to vector<1x1x1xf32>
    %15 = vector.extract %14[0, 0, 0] : f32 from vector<1x1x1xf32>
    %c0_5 = arith.constant 0 : index
    %c0_6 = arith.constant 0 : index
    %16 = memref.load %arg2[%c0_5, %c0_6] : memref<1x1xf32, #tpu.memory_space<smem>>
    memref.store %15, %arg2[%c0_5, %c0_6] : memref<1x1xf32, #tpu.memory_space<smem>>
    %cst_7 = arith.constant 0.000000e+00 : f32
    %17 = vector.broadcast %cst_7 : f32 to vector<1x2xf32>
    %18 = arith.subf %17, %1 : vector<1x2xf32>
    %19 = arith.mulf %18, %4 : vector<1x2xf32>
    %20 = arith.mulf %19, %3 : vector<1x2xf32>
    %cst_8 = arith.constant 2.000000e+00 : f32
    %21 = vector.broadcast %cst_8 : f32 to vector<1x2xf32>
    %22 = arith.mulf %21, %0 : vector<1x2xf32>
    %cst_9 = arith.constant 1.000000e+00 : f32
    %23 = vector.broadcast %cst_9 : f32 to vector<1x2xf32>
    %24 = arith.addf %23, %2 : vector<1x2xf32>
    %25 = tpu.reciprocal %24 : vector<1x2xf32> -> vector<1x2xf32>
    %26 = arith.mulf %22, %25 : vector<1x2xf32>
    %27 = arith.addf %20, %26 : vector<1x2xf32>
    %c0_10 = arith.constant 0 : index
    %c0_11 = arith.constant 0 : index
    %28 = vector.load %arg3[%c0_10, %c0_11] : memref<1x2xf32, #tpu.memory_space<vmem>>, vector<1x2xf32>
    tpu.vector_store %arg3[%c0_10, %c0_11], %27 {strides = array<i32>} : memref<1x2xf32, #tpu.memory_space<vmem>>, vector<1x2xf32>,
    %cst_12 = arith.constant 5.000000e-01 : f32
    %29 = vector.broadcast %cst_12 : f32 to vector<1x2xf32>
    %30 = arith.mulf %29, %4 : vector<1x2xf32>
    %c0_13 = arith.constant 0 : index
    %c0_14 = arith.constant 0 : index
    %31 = vector.load %arg4[%c0_13, %c0_14] : memref<1x2xf32, #tpu.memory_space<vmem>>, vector<1x2xf32>
    tpu.vector_store %arg4[%c0_13, %c0_14], %30 {strides = array<i32>} : memref<1x2xf32, #tpu.memory_space<vmem>>, vector<1x2xf32>,
    return
  }
}

</mosaic_0001>

<bundles_post_ra>
// kernel: tpu_custom_call.1
= control target key start
LH: loop header
LB: loop body
LE: loop exit
PB: predicated region body
PF: predicated region fallthrough
CT: control target
= control target key end

     0   :  { %10 = vsyncpa [#allocation3], 0  ;;  %s239_s0 = inlined_call_operand.hbm [shape: f32[1,2], index: 0, kind: input, shape index: {}]   ;;  %s240_s1 = inlined_call_operand.vmem [shape: f32[1,2], index: 1, kind: input, shape index: {}]   ;;  %s241_s2 = inlined_call_operand.hbm [shape: f32[1,1], index: 2, kind: output, shape index: {0}]   ;;  %s242_s3 = inlined_call_operand.hbm [shape: f32[1,2], index: 3, kind: output, shape index: {1}]   ;;  %s243_s4 = inlined_call_operand.hbm [shape: f32[1,2], index: 4, kind: output, shape index: {2}]  }
   0x1   :  { %11 = vsyncpa [#allocation5], 0 }
   0x2   :  { %12 = vsyncpa [#allocation4], 0 }
   0x3   :  { %13 = vsyncpa [#allocation9], 0  ;;  %s192_s15 = smov [#allocation2]  }
   0x4   :  { %s20_s16 = sshll.u32 %s192_s15, 4  ;;  %s21_s16 = int_to_ptr.vmem [resolvable:$true] %s20_s16 }
   0x5   :  { %s124_s17 = scalar_lea.vmem %s21_s16, 16  ;;  %s128_s18 = scalar_lea.vmem %s21_s16, 32 }
   0x6   :  { %p125_p0 = scmp.ne.s32.totalorder %s21_s16, %s124_s17  ;;  %p129_p1 = scmp.lt.s32.totalorder %s21_s16, %s21_s16 }
   0x7   :  { %p130_p2 = scmp.lt.s32.totalorder %s128_s18, %s124_s17 }
   0x9   :  { %p131_p3 = por %p130_p2, %p129_p1 }
   0xb   :  { %p132_p4 = pnand %p131_p3, %p125_p0 }
   0xd   :  { %135 = shalt.err (!%p132_p4)
}
   0xe   :  { %23 = dma.hbm_to_vmem [thread:$0]  %s239_s0, 16, %s21_s16, [#allocation3]  }
   0xf   :  { %184 = dma.done.wait [#allocation3], 16  }
  0x10   :  { %185 = vsyncadd [#allocation3], 4294967280  ;;  %v29_v0 = vld [vmem:[#allocation2] sm:$0x1]  ;;  %vm40_vm0 = vcmask 8192   ;;  %s193_s0 = smov [#allocation7]  }
  0x11   :  { %v31_v1 = vmul.f32 %v29_v0, %v29_v0  ;;  %110 = vrcp.f32 %v29_v0  ;;  %v30_v3 = vld [vmem:[%s240_s1] sm:$0x1]  ;;  %v56_v15 = vmul.f32 2.0, %v29_v0  ;;  %s76_s1 = sshll.u32 %s193_s0, 4  ;;  %s194_s23 = smov [#allocation8]   ;;  %s77_s1 = int_to_ptr.vmem [resolvable:$true] %s76_s1 }
  0x12   :  { %v53_v4 = vsub.f32 0.0, %v30_v3  ;;  %s86_s24 = sshll.u32 %s194_s23, 4  ;;  %s136_s25 = scalar_lea.vmem %s77_s1, 16  ;;  %s87_s24 = int_to_ptr.vmem [resolvable:$true] %s86_s24 }
  0x13   :  { %v36_v2 = vadd.f32 1.0, %v31_v1  ;;  %p137_p5 = scmp.ne.s32.totalorder %s77_s1, %s136_s25  ;;  %s140_s26 = scalar_lea.vmem %s77_s1, 32 }
  0x14   :  { %p141_p6 = scmp.lt.s32.totalorder %s77_s1, %s77_s1  ;;  %p142_p7 = scmp.lt.s32.totalorder %s140_s26, %s136_s25 }
  0x15   :  { %112 = vlog2.f32 %v36_v2 }
  0x16   :  { %114 = vrcp.f32 %v36_v2  ;;  %p143_p8 = por %p142_p7, %p141_p6 }
  0x18   :  { %p144_p9 = pnand %p143_p8, %p137_p5 }
  0x1e   :  { %v111_v5 = vpop.eup %110 }
  0x1f   :  { %v33_v6 = vmul.f32 %v111_v5, %v111_v5 }
  0x21   :  { %v34_v7 = vmul.f32 0.5, %v33_v6  ;;  %v54_v8 = vmul.f32 %v53_v4, %v33_v6 }
  0x22   :  { %v113_v9 = vpop.eup %112 }
  0x23   :  { %v35_v10 = vmul.f32 %v34_v7, %v30_v3  ;;  %v38_v11 = vmul.f32 0.6931472, %v113_v9  ;;  %61 = vst.msk [vmem:[#allocation8] sm:$0x1] %vm40_vm0, %v34_v7  ;;  %v115_v14 = vpop.eup %114  ;;  %v55_v16 = vmul.f32 %v111_v5, %v54_v8 }
  0x24   :  { %v58_v17 = vmul.f32 %v115_v14, %v56_v15 }
  0x25   :  { %v39_v12 = vadd.f32 %v38_v11, %v35_v10 }
  0x26   :  { %v59_v18 = vadd.f32 %v58_v17, %v55_v16 }
  0x27   :  { %v41_v13 = vsel %vm40_vm0, %v39_v12, 0.0 }
  0x28   :  { %42 = vadd.xlane.f32.xlu0 %v41_v13  ;;  %60 = vst.msk [vmem:[#allocation7] sm:$0x1] %vm40_vm0, %v59_v18 }
  0x29   :  { %147 = shalt.err (!%p144_p9)
}
  0x2a   :  { %79 = dma.vmem_to_hbm [thread:$0]  %s77_s1, 16, %s242_s3, [#allocation4]  }
  0x2b   :  { %s156_s29 = scalar_lea.vmem %s87_s24, 16  ;;  %s160_s30 = scalar_lea.vmem %s87_s24, 32 }
  0x2c   :  { %p157_p10 = scmp.ne.s32.totalorder %s87_s24, %s156_s29  ;;  %p161_p11 = scmp.lt.s32.totalorder %s87_s24, %s87_s24 }
  0x2d   :  { %p162_p12 = scmp.lt.s32.totalorder %s160_s30, %s156_s29 }
  0x2f   :  { %p163_p13 = por %p162_p12, %p161_p11 }
  0x31   :  { %p164_p0 = pnand %p163_p13, %p157_p10 }
  0x33   :  { %167 = shalt.err (!%p164_p0)
}
  0x34   :  { %89 = dma.vmem_to_hbm [thread:$0]  %s87_s24, 16, %s243_s4, [#allocation9]  }
  0x35   :  { %s195_s7 = smov [#allocation6]  }
  0xb1   :  { %v43_v19 = vpop.xlane.xlu0 %42 }
  0xb2   :  { %v44_v20 = vrot.slane %v43_v19, 4 }
  0xb4   :  { %v45_v21 = vadd.f32 %v44_v20, %v43_v19 }
  0xb6   :  { %v46_v22 = vrot.slane %v45_v21, 2 }
  0xb8   :  { %v47_v23 = vadd.f32 %v46_v22, %v45_v21 }
  0xba   :  { %v48_v24 = vrot.slane %v47_v23, 1 }
  0xbc   :  { %v49_v25 = vadd.f32 %v48_v24, %v47_v23 }
  0xbe   :  { %104 = vpush %v49_v25 }
  0xef   :  { %s105_s3 = spop %104 }
  0xf0   :  { %52 = sst [smem:[#allocation6]] %s105_s3 }
  0xf1   :  { %69 = dma.smem_to_hbm %s195_s7, 16, %s241_s2, [#allocation5]  }
  0xf2   :  { %186 = dma.done.wait [#allocation5], 16  }
  0xf3   :  { %187 = vsyncadd [#allocation5], 4294967280 }
  0xf4   :  { %188 = dma.done.wait [#allocation4], 16  }
  0xf5   :  { %189 = vsyncadd [#allocation4], 4294967280 }
  0xf6   :  { %190 = dma.done.wait [#allocation9], 16  }
  0xf7   :  { %191 = vsyncadd [#allocation9], 4294967280 }
  0xf8   :  { %99 = sfence }
  0xf9   :  { %100 = vsyncpa [#allocation3], 1 }
  0xfa   :  { %101 = vsyncpa [#allocation4], 1 }
  0xfb   :  { %102 = vsyncpa [#allocation9], 1 }
  0xfc   :  { %103 = vsyncpa [#allocation5], 1 }

</bundles_post_ra>
